<compile_context>
chip_gen: v6e
topology: v6e:2x2x1
jax: 0.10.0
libtpu: 0.0.40
codegen_flags: <defaults>
</compile_context>

<pallas_src>
import jax
import jax.numpy as jnp
from jax.experimental import pallas as pl
from jax.experimental.pallas import tpu as pltpu


def _scale_kernel(w_ref, x_ref, o_ref):
    # w_ref: (1,) scalar weight (promoted dtype) in SMEM.
    # x_ref: (row_tile, cols) VMEM tile in x's native dtype.
    # o_ref: (row_tile, cols) VMEM tile in the promoted output dtype.
    # One full-vreg VPU multiply; the cast is free (DMA is the only bottleneck).
    o_ref[...] = (x_ref[...] * w_ref[0]).astype(o_ref.dtype)


_SUBLANE = {4: 8, 2: 16, 1: 32}  # dtype itemsize -> minimal sublane granule


def _scale_impl(x: jax.Array, weight: jax.Array) -> jax.Array:
    """Pallas equivalent of ScaleModule.forward: x * weight (scalar param)."""
    w_arr = jnp.asarray(weight)
    out_dtype = jnp.result_type(x.dtype, w_arr.dtype)    # torch-style promotion
    w = w_arr.reshape((1,)).astype(out_dtype)

    in_itemsize = jnp.dtype(x.dtype).itemsize
    out_itemsize = jnp.dtype(out_dtype).itemsize

    n = x.size
    lane = 128
    flat = x.reshape(-1)

    # Kernel handles the lane-divisible bulk; the <128-element tail (if any)
    # is a plain XLA multiply (costs nothing, avoids pad+slice HBM passes).
    bulk = (n // lane) * lane
    tail = n - bulk

    if bulk == 0:
        # Degenerate tiny input: no lane-dense slab to run the kernel on.
        return (flat * w[0]).astype(out_dtype).reshape(x.shape)

    # Lane-dense slab: widest power-of-two last dim up to 1024 (unmasked vst),
    # no padding copies needed since bulk % 128 == 0 by construction.
    cols = lane
    while cols * 2 <= 1024 and bulk % (cols * 2) == 0:
        cols *= 2
    rows = bulk // cols

    # Row-tile selection: ~4 MiB of input per tile, multiple of the sublane
    # granule so the (8,128) block constraint holds for both dtypes; Pallas
    # masks the ragged final block if rows isn't a multiple of row_tile.
    granule = max(_SUBLANE.get(in_itemsize, 8), _SUBLANE.get(out_itemsize, 8))
    max_tile_bytes = 4 * 1024 * 1024
    row_tile = max(granule,
                   (max_tile_bytes // (cols * in_itemsize)) // granule * granule)
    # Medium/large slabs: force >= 4 grid steps so v7x's 2 TensorCores can both
    # take "parallel" work (no-op on single-TC v5e/v6e).
    total_bytes = rows * cols * in_itemsize
    if total_bytes > 2 * 1024 * 1024:
        quarter = pl.cdiv(pl.cdiv(rows, 4), granule) * granule
        row_tile = max(granule, min(row_tile, quarter))
    if rows <= row_tile:
        row_tile = rows           # small input: single full-array block is legal
    grid = (pl.cdiv(rows, row_tile),)

    x2d = (flat if tail == 0 else flat[:bulk]).reshape(rows, cols)

    out2d = pl.pallas_call(
        _scale_kernel,
        out_shape=jax.ShapeDtypeStruct((rows, cols), out_dtype),
        grid_spec=pltpu.PrefetchScalarGridSpec(
            num_scalar_prefetch=0,
            grid=grid,
            in_specs=[
                pl.BlockSpec(memory_space=pltpu.SMEM),              # scalar weight
                pl.BlockSpec((row_tile, cols), lambda i: (i, 0)),   # input tile
            ],
            out_specs=pl.BlockSpec((row_tile, cols), lambda i: (i, 0)),
        ),
        compiler_params=pltpu.CompilerParams(
            dimension_semantics=("parallel",),      # shard rows across v7x's TCs
            vmem_limit_bytes=32 * 1024 * 1024,      # double-buffered tiles fit
        ),
        cost_estimate=pl.CostEstimate(
            flops=bulk,
            transcendentals=0,
            bytes_accessed=bulk * (in_itemsize + out_itemsize) + out_itemsize,
        ),
    )(w, x2d)

    out_flat = out2d.reshape(-1)
    if tail:
        tail_out = (flat[bulk:] * w[0]).astype(out_dtype)
        out_flat = jnp.concatenate([out_flat, tail_out])
    return out_flat.reshape(x.shape)


# jit the wrapper so the reshape glue + pallas_call dispatch as one executable.
scale = jax.jit(_scale_impl)


if __name__ == "__main__":
    key = jax.random.PRNGKey(0)
    # Small NCHW input consistent with ScaleModule usage.
    x = jax.random.normal(key, (2, 4, 16, 16), dtype=jnp.float32)

    # Deterministic parameter matching ScaleModule(weight=2.0):
    # self.weight = nn.Parameter(torch.tensor([2.0]))
    weight = jnp.array([2.0], dtype=jnp.float32)

    ref = x * weight
    y = jax.block_until_ready(scale(x, weight))

    assert y.shape == x.shape
    assert y.dtype == ref.dtype
    assert jnp.allclose(y, ref, atol=1e-6, rtol=1e-6)

    print("KERNEL_OK")
</pallas_src>

<mosaic_0001>
module attributes {stable_mosaic.version = 11 : i64} {
  func.func @_scale_kernel(%arg0: i32, %arg1: memref<1xf32, #tpu.memory_space<smem>>, %arg2: memref<2x1024xf32, #tpu.memory_space<vmem>>, %arg3: memref<2x1024xf32, #tpu.memory_space<vmem>>) attributes {dimension_semantics = [#tpu.dimension_semantics<parallel>], iteration_bounds = array<i64: 1>, scalar_prefetch = 0 : i64, scratch_operands = 0 : i64, tpu.core_type = #tpu.core_type<tc>, window_params = [{transform_indices = @transform_0, window_bounds = array<i64: 1>}, {transform_indices = @transform_1, window_bounds = array<i64: 2, 1024>}, {transform_indices = @transform_2, window_bounds = array<i64: 2, 1024>}]} {
    %c0 = arith.constant 0 : index
    %c0_0 = arith.constant 0 : index
    %0 = vector.load %arg2[%c0, %c0_0] : memref<2x1024xf32, #tpu.memory_space<vmem>>, vector<2x1024xf32>
    %c0_1 = arith.constant 0 : index
    %1 = memref.load %arg1[%c0_1] : memref<1xf32, #tpu.memory_space<smem>>
    %2 = vector.broadcast %1 : f32 to vector<2x1024xf32>
    %3 = arith.mulf %0, %2 : vector<2x1024xf32>
    %c0_2 = arith.constant 0 : index
    %c0_3 = arith.constant 0 : index
    %4 = vector.load %arg3[%c0_2, %c0_3] : memref<2x1024xf32, #tpu.memory_space<vmem>>, vector<2x1024xf32>
    tpu.vector_store %arg3[%c0_2, %c0_3], %3 {strides = array<i32>} : memref<2x1024xf32, #tpu.memory_space<vmem>>, vector<2x1024xf32>,
    return
  }
  func.func @transform_0(%arg0: i32) -> i32 {
    %c0_i32 = arith.constant 0 : i32
    %c0_i32_0 = arith.constant 0 : i32
    return %c0_i32 : i32
  }
  func.func @transform_1(%arg0: i32) -> (i32, i32) {
    %c0_i32 = arith.constant 0 : i32
    %c0_i32_0 = arith.constant 0 : i32
    return %arg0, %c0_i32 : i32, i32
  }
  func.func @transform_2(%arg0: i32) -> (i32, i32) {
    %c0_i32 = arith.constant 0 : i32
    %c0_i32_0 = arith.constant 0 : i32
    return %arg0, %c0_i32 : i32, i32
  }
}

</mosaic_0001>

<bundles_post_ra>
// kernel: _scale_impl.1
= control target key start
LH: loop header
LB: loop body
LE: loop exit
PB: predicated region body
PF: predicated region fallthrough
CT: control target
= control target key end

     0   :  { %s54_s0 = inlined_call_operand.<no memory space> [shape: f32[1], index: 0, kind: input, shape index: {}]   ;;  %s55_s1 = inlined_call_operand.vmem [shape: f32[2,1024], index: 1, kind: input, shape index: {}]   ;;  %s56_s2 = inlined_call_operand.vmem [shape: f32[2,1024], index: 2, kind: output, shape index: {}]  }
   0x1   :  { %v12_v0 = vld [vmem:[%s55_s1] sm:$0xff]  ;;  %v15_v1 = vstv %s54_s0  ;;  %v13_v2 = vld [vmem:[%s55_s1 + $0x8] sm:$0xff] }
   0x2   :  { %v16_v3 = vmul.f32 %v15_v1, %v12_v0  ;;  %v17_v4 = vmul.f32 %v15_v1, %v13_v2 }
   0x4   :  { %18 = vst [vmem:[%s56_s2] sm:$0xff] %v16_v3  ;;  %19 = vst [vmem:[%s56_s2 + $0x8] sm:$0xff] %v17_v4 }

</bundles_post_ra>
